<compile_context>
chip_gen: v7x
topology: tpu7x:2x2x1
jax: 0.10.0
libtpu: 0.0.40
codegen_flags: <defaults>
</compile_context>

<pallas_src>
import jax
import jax.numpy as jnp
from jax.experimental import pallas as pl
from jax.experimental.pallas import tpu as pltpu


def _round_up(x, m):
    return ((x + m - 1) // m) * m


def linear_relu_kernel(x_ref, w_ref, b_ref, o_ref):
    # MXU matmul with f32 accumulation, then f32 epilogue (bias + ReLU) on the
    # VPU; cast only at the final store (no-op for f32 outputs).
    y = jnp.dot(x_ref[...], w_ref[...], preferred_element_type=jnp.float32)
    y = y + b_ref[...]                       # (1, N) broadcast over rows
    o_ref[...] = jnp.maximum(y, 0.0).astype(o_ref.dtype)


def linear_relu(x, w, b, *, tm=1024):
    """x: (B, K) f32, w: (K, N) f32, b: (N,) or (1, N) f32 -> (B, N) f32."""
    B, K = x.shape
    Kw, N = w.shape
    assert K == Kw, (K, Kw)
    b2 = b.reshape(1, N)

    # Row tile: big for HBM-roofline efficiency; multiple of 8 (sublane) unless
    # it equals the full batch dim; at least 2 grid steps when B > 8 so the
    # "parallel" batch axis can shard across both TensorCores on v7x.
    if B <= 8:
        tm_eff = B                                   # single tiny full-dim tile
    else:
        tm_eff = min(tm, max(8, _round_up(pl.cdiv(B, 2), 8)))
    grid = (pl.cdiv(B, tm_eff),)

    itemsize = jnp.dtype(x.dtype).itemsize
    cost = pl.CostEstimate(
        flops=2 * B * K * N,
        transcendentals=0,
        bytes_accessed=(B * K + K * N + N + B * N) * itemsize,
    )

    return pl.pallas_call(
        linear_relu_kernel,
        out_shape=jax.ShapeDtypeStruct((B, N), x.dtype),
        grid_spec=pl.GridSpec(
            grid=grid,
            in_specs=[
                pl.BlockSpec((tm_eff, K), lambda i: (i, 0)),   # x row tile (K full)
                pl.BlockSpec((K, N), lambda i: (0, 0)),        # full weight
                pl.BlockSpec((1, N), lambda i: (0, 0)),        # full bias
            ],
            out_specs=pl.BlockSpec((tm_eff, N), lambda i: (i, 0)),
        ),
        compiler_params=pltpu.CompilerParams(
            dimension_semantics=("parallel",),                 # batch axis -> megacore
        ),
        cost_estimate=cost,
    )(x, w, b2)


# Jit the whole forward at the call site so the reshape + pallas_call are one
# dispatch (fixed overhead dominates at tiny shapes).
linear_relu_jit = jax.jit(linear_relu)


if __name__ == "__main__":
    key = jax.random.PRNGKey(0)
    kx, kw, kb = jax.random.split(key, 3)

    batch, in_features, out_features = 8, 30, 10

    # Deterministic parameter init (nn.Linear-style uniform(-1/sqrt(fan_in), +)).
    bound = 1.0 / jnp.sqrt(jnp.float32(in_features))
    W = jax.random.uniform(kw, (in_features, out_features), jnp.float32,
                           minval=-bound, maxval=bound)        # stored as (in, out)
    bvec = jax.random.uniform(kb, (out_features,), jnp.float32,
                              minval=-bound, maxval=bound)

    X = jax.random.normal(kx, (batch, in_features), jnp.float32)

    out = linear_relu_jit(X, W, bvec)
    jax.block_until_ready(out)

    # Reference check against plain JAX (same semantics as Linear + ReLU).
    ref = jnp.maximum(X @ W + bvec[None, :], 0.0)
    assert out.shape == (batch, out_features)
    assert jnp.allclose(out, ref, atol=1e-5, rtol=1e-5)

    print("KERNEL_OK")
</pallas_src>

<mosaic_0001>
module attributes {stable_mosaic.version = 11 : i64} {
  func.func @linear_relu_kernel(%arg0: i32, %arg1: memref<8x30xf32, #tpu.memory_space<vmem>>, %arg2: memref<30x10xf32, #tpu.memory_space<vmem>>, %arg3: memref<1x10xf32, #tpu.memory_space<vmem>>, %arg4: memref<8x10xf32, #tpu.memory_space<vmem>>) attributes {dimension_semantics = [#tpu.dimension_semantics<parallel>], iteration_bounds = array<i64: 1>, scalar_prefetch = 0 : i64, scratch_operands = 0 : i64, tpu.core_type = #tpu.core_type<tc>, window_params = [{transform_indices = @transform_0, window_bounds = array<i64: 8, 30>}, {pipeline_mode = #tpu.pipeline_mode<synchronous>, transform_indices = @transform_1, window_bounds = array<i64: 30, 10>}, {pipeline_mode = #tpu.pipeline_mode<synchronous>, transform_indices = @transform_2, window_bounds = array<i64: 1, 10>}, {transform_indices = @transform_3, window_bounds = array<i64: 8, 10>}]} {
    %c0 = arith.constant 0 : index
    %c0_0 = arith.constant 0 : index
    %0 = vector.load %arg1[%c0, %c0_0] : memref<8x30xf32, #tpu.memory_space<vmem>>, vector<8x30xf32>
    %c0_1 = arith.constant 0 : index
    %c0_2 = arith.constant 0 : index
    %1 = vector.load %arg2[%c0_1, %c0_2] : memref<30x10xf32, #tpu.memory_space<vmem>>, vector<30x10xf32>
    %cst = arith.constant dense<0.000000e+00> : vector<8x10xf32>
    %2 = tpu.matmul %0, %1, %cst {dimension_numbers = #tpu.dot_dimension_numbers<[1], [0], [0], [1], [0, 0, 1, 1], [], []>} : vector<8x30xf32>, vector<30x10xf32>, vector<8x10xf32> -> vector<8x10xf32>
    %c0_3 = arith.constant 0 : index
    %c0_4 = arith.constant 0 : index
    %3 = vector.load %arg3[%c0_3, %c0_4] : memref<1x10xf32, #tpu.memory_space<vmem>>, vector<1x10xf32>
    %4 = vector.broadcast %3 : vector<1x10xf32> to vector<8x10xf32>
    %5 = arith.addf %2, %4 : vector<8x10xf32>
    %cst_5 = arith.constant 0.000000e+00 : f32
    %6 = vector.broadcast %cst_5 : f32 to vector<8x10xf32>
    %7 = arith.maximumf %5, %6 : vector<8x10xf32>
    %c0_6 = arith.constant 0 : index
    %c0_7 = arith.constant 0 : index
    %8 = vector.load %arg4[%c0_6, %c0_7] : memref<8x10xf32, #tpu.memory_space<vmem>>, vector<8x10xf32>
    tpu.vector_store %arg4[%c0_6, %c0_7], %7 {strides = array<i32>} : memref<8x10xf32, #tpu.memory_space<vmem>>, vector<8x10xf32>,
    return
  }
  func.func @transform_0(%arg0: i32) -> (i32, i32) {
    %c0_i32 = arith.constant 0 : i32
    %c0_i32_0 = arith.constant 0 : i32
    return %arg0, %c0_i32 : i32, i32
  }
  func.func @transform_1(%arg0: i32) -> (i32, i32) {
    %c0_i32 = arith.constant 0 : i32
    %c0_i32_0 = arith.constant 0 : i32
    %c0_i32_1 = arith.constant 0 : i32
    return %c0_i32, %c0_i32_0 : i32, i32
  }
  func.func @transform_2(%arg0: i32) -> (i32, i32) {
    %c0_i32 = arith.constant 0 : i32
    %c0_i32_0 = arith.constant 0 : i32
    %c0_i32_1 = arith.constant 0 : i32
    return %c0_i32, %c0_i32_0 : i32, i32
  }
  func.func @transform_3(%arg0: i32) -> (i32, i32) {
    %c0_i32 = arith.constant 0 : i32
    %c0_i32_0 = arith.constant 0 : i32
    return %arg0, %c0_i32 : i32, i32
  }
}

</mosaic_0001>

<bundles_post_ra>
// kernel: linear_relu.1
= control target key start
LH: loop header
LB: loop body
LE: loop exit
PB: predicated region body
PF: predicated region fallthrough
CT: control target
= control target key end

     0   :  { %vm31_vm0 = vcmask 1045504   ;;  %v177_v3 = vmov 0.0|0.0   ;;  %vm178_vm1 = vmmov 0   ;;  %v179_v6 = vmov 0.0   ;;  %s232_s0 = inlined_call_operand.vmem [shape: f32[8,30], index: 0, kind: input, shape index: {}]   ;;  %s233_s1 = inlined_call_operand.vmem [shape: f32[30,10], index: 1, kind: input, shape index: {}]   ;;  %s234_s2 = inlined_call_operand.vmem [shape: f32[1,10], index: 2, kind: input, shape index: {}]   ;;  %s235_s3 = inlined_call_operand.hbm [shape: f32[8,10], index: 3, kind: output, shape index: {}]  }
   0x1   :  { %v16_v0 = vld [vmem:[%s233_s1] sm:$0xff]  ;;  %v17_v1 = vld [vmem:[%s233_s1 + $0x8] sm:$0xff]  ;;  %v18_v2 = vld [vmem:[%s233_s1 + $0x10] sm:$0xff]  ;;  %141 = vmatprep.subr.bf16.mxu0 %v177_v3  ;;  %138 = vmatprep.mubr.msk.f32.mxu0 %vm178_vm1, %v179_v6 }
   0x2   :  { %v142_v4 = vpack.c.bf16 %v17_v1, %v16_v0  ;;  %v19_v5 = vld [vmem:[%s233_s1 + $0x18] sm:$0x3f] }
   0x3   :  { %8 = vsyncpa [#allocation3], 0  ;;  %v145_v7 = vpack.c.bf16 %v19_v5, %v18_v2  ;;  %vm180_vm2 = vmmov 1   ;;  %v15_v8 = vld [vmem:[%s232_s0] sm:$0xff]  ;;  %vm27_vm4 = vcmask 244736   ;;  %s181_s1 = smov [#allocation2]  }
   0x4   :  { %143 = vmatpush3.bf16.msra.mxu0 %v142_v4  ;;  %vm146_vm3 = vmpackc.low %vm31_vm0, %vm180_vm2  ;;  %v122_v9 = vld [vmem:[%s234_s2] ss:$0 sm:$0xff]  ;;  %s114_s24 = sshll.u32 %s181_s1, 4  ;;  %vm106_vm5 = vcmask 80896   ;;  %s115_s24 = int_to_ptr.vmem [resolvable:$true] %s114_s24 }
   0x5   :  { %144 = vmatprep.subr.bf16.mxu0 %v177_v3  ;;  %s153_s25 = scalar_lea.vmem %s115_s24, 128  ;;  %p158_p1 = scmp.lt.s32.totalorder %s115_s24, %s115_s24 }
   0x6   :  { %p154_p0 = scmp.ne.s32.totalorder %s115_s24, %s153_s25  ;;  %p159_p2 = scmp.lt.s32.totalorder %s153_s25, %s153_s25 }
   0x8   :  { %147 = vmatpush3.bf16.msk.msra.mxu0 %vm146_vm3, %v145_v7  ;;  %p160_p3 = por %p159_p2, %p158_p1 }
   0xa   :  { %p161_p4 = pnand %p160_p3, %p154_p0 }
   0xb   :  { %139 = vmatmul.mubr.msk.f32.vlgmr.msra.gmra.mrb[0].mxu0 %vm27_vm4, %v15_v8 }
  0xde   :  { %v101_v10 = vpop.f32.mrb[0].mxu0 }
  0xdf   :  { %v102_v11 = vadd.f32 %v122_v9, %v101_v10  ;;  %v140_v12 = vpop.f32.mrb[1].mxu0 }
  0xe1   :  { %v105_v13 = vmax.f32 %v102_v11, 0.0 }
  0xe3   :  { %107 = vst.msk [vmem:[#allocation2] sm:$0xff] %vm106_vm5, %v105_v13 }
  0xe4   :  { %164 = shalt.err (!%p161_p4)
}
  0xe5   :  { %s165_s2 = scalar_lea.hbm %s235_s3, 128 }
  0xe6   :  { %p166_p5 = scmp.ne.s32.totalorder %s235_s3, %s165_s2  ;;  %p169_p6 = scmp.lt.u32.totalorder %s165_s2, %s235_s3 }
  0xe8   :  { %p171_p7 = pnand %p169_p6, %p166_p5 }
  0xea   :  { %174 = shalt.err (!%p171_p7)
}
  0xeb   :  { %117 = dma.vmem_to_hbm [thread:$0]  %s115_s24, 128, %s235_s3, [#allocation3]  }
  0xec   :  { %175 = dma.done.wait [#allocation3], 128  }
  0xed   :  { %176 = vsyncadd [#allocation3], 4294967168 }
  0xee   :  { %121 = vsyncpa [#allocation3], 1 }

</bundles_post_ra>
